<compile_context>
chip_gen: v7x
topology: tpu7x:2x2x1
jax: 0.10.0
libtpu: 0.0.40
codegen_flags: <defaults>
</compile_context>

<pallas_src>
import jax
import jax.numpy as jnp
from jax.experimental import pallas as pl
from jax.experimental.pallas import tpu as pltpu


def _affine_kernel(params_ref, x_ref, o_ref):
    # params_ref: SMEM (3,) f32 -> [w_eff0, w_eff1, b_eff]
    # x_ref:      VMEM (2, TB)  -> lane-dense transposed input block
    # o_ref:      VMEM (1, TB)
    w0 = params_ref[0]
    w1 = params_ref[1]
    b = params_ref[2]
    x = x_ref[...]                                   # (2, TB)
    y = w0 * x[0:1, :] + w1 * x[1:2, :] + b          # pure lane-parallel VPU fma
    o_ref[...] = y.astype(o_ref.dtype)


def model_forward(x, w1, b1, w2, b2, *, block_b=8192):
    """Forward of Model: layer2(layer1(x)).

    x: (B, 2) f32.  w1: (1, 2), b1: (1,), w2: (1, 1), b2: (1,)  (torch layout).
    Returns (B, 1) f32.
    """
    B = x.shape[0]

    # --- Fold the two affine layers at trace time (f32, outside the kernel). ---
    w2s = w2.reshape(()).astype(jnp.float32)
    w_eff = w2s * w1.reshape(2).astype(jnp.float32)                       # (2,)
    b_eff = (w2s * b1.reshape(()).astype(jnp.float32)
             + b2.reshape(()).astype(jnp.float32))                        # ()
    params = jnp.concatenate([w_eff, b_eff[None]]).astype(jnp.float32)    # (3,)

    # --- Lane-dense layout: features on sublanes, batch on the 128 lanes. ---
    xt = x.T.astype(jnp.float32)                                          # (2, B)

    LANE = 128
    Bp = pl.cdiv(max(B, 1), LANE) * LANE          # pad batch to lane multiple
    tb = min(block_b, Bp)                         # lane-tile width
    Bp = pl.cdiv(Bp, tb) * tb                     # pad to a whole number of tiles
    if Bp != B:
        xt = jnp.pad(xt, ((0, 0), (0, Bp - B)))

    grid = (Bp // tb,)

    out = pl.pallas_call(
        _affine_kernel,
        out_shape=jax.ShapeDtypeStruct((1, Bp), jnp.float32),
        grid_spec=pltpu.PrefetchScalarGridSpec(
            num_scalar_prefetch=1,                 # params -> SMEM
            grid=grid,
            in_specs=[pl.BlockSpec((2, tb), lambda i, params: (0, i))],
            out_specs=pl.BlockSpec((1, tb), lambda i, params: (0, i)),
        ),
        compiler_params=pltpu.CompilerParams(
            dimension_semantics=("parallel",),     # shard batch tiles across TCs (v7x)
        ),
    )(params, xt)

    return out[0, :B].reshape(B, 1)


def _init_params(key):
    # Deterministic init mimicking torch's uniform(-1/sqrt(fan_in), 1/sqrt(fan_in)).
    k1, k2, k3, k4 = jax.random.split(key, 4)
    bound1 = 1.0 / jnp.sqrt(2.0)
    bound2 = 1.0
    w1 = jax.random.uniform(k1, (1, 2), jnp.float32, -bound1, bound1)
    b1 = jax.random.uniform(k2, (1,), jnp.float32, -bound1, bound1)
    w2 = jax.random.uniform(k3, (1, 1), jnp.float32, -bound2, bound2)
    b2 = jax.random.uniform(k4, (1,), jnp.float32, -bound2, bound2)
    return w1, b1, w2, b2


def _reference(x, w1, b1, w2, b2):
    x1 = x @ w1.T + b1
    return x1 @ w2.T + b2


if __name__ == "__main__":
    key = jax.random.PRNGKey(0)
    kx, kp = jax.random.split(key)
    w1, b1, w2, b2 = _init_params(kp)

    # Small batch consistent with the module's Linear(2, ...) input.
    B = 8
    x = jax.random.normal(kx, (B, 2), jnp.float32)
    out = model_forward(x, w1, b1, w2, b2)
    jax.block_until_ready(out)
    ref = _reference(x, w1, b1, w2, b2)
    assert out.shape == (B, 1)
    assert jnp.allclose(out, ref, atol=1e-5), "mismatch vs reference (B=8)"

    # Exercise the lane-padding path with a batch that is not a lane multiple.
    B2 = 300
    x2 = jax.random.normal(jax.random.PRNGKey(1), (B2, 2), jnp.float32)
    out2 = model_forward(x2, w1, b1, w2, b2)
    jax.block_until_ready(out2)
    ref2 = _reference(x2, w1, b1, w2, b2)
    assert out2.shape == (B2, 1)
    assert jnp.allclose(out2, ref2, atol=1e-5), "mismatch vs reference (B=300)"

    print("KERNEL_OK")
</pallas_src>

<mosaic_0001>
module attributes {stable_mosaic.version = 11 : i64} {
  func.func @_affine_kernel(%arg0: i32, %arg1: memref<3xf32, #tpu.memory_space<smem>>, %arg2: memref<2x128xf32, #tpu.memory_space<vmem>>, %arg3: memref<1x128xf32, #tpu.memory_space<vmem>>) attributes {dimension_semantics = [#tpu.dimension_semantics<parallel>], iteration_bounds = array<i64: 1>, scalar_prefetch = 1 : i64, scratch_operands = 0 : i64, tpu.core_type = #tpu.core_type<tc>, window_params = [{transform_indices = @transform_0, window_bounds = array<i64: 2, 128>}, {transform_indices = @transform_1, window_bounds = array<i64: 1, 128>}]} {
    %c0 = arith.constant 0 : index
    %0 = memref.load %arg1[%c0] : memref<3xf32, #tpu.memory_space<smem>>
    %c1 = arith.constant 1 : index
    %1 = memref.load %arg1[%c1] : memref<3xf32, #tpu.memory_space<smem>>
    %c2 = arith.constant 2 : index
    %2 = memref.load %arg1[%c2] : memref<3xf32, #tpu.memory_space<smem>>
    %c0_0 = arith.constant 0 : index
    %c0_1 = arith.constant 0 : index
    %3 = vector.load %arg2[%c0_0, %c0_1] : memref<2x128xf32, #tpu.memory_space<vmem>>, vector<2x128xf32>
    %4 = vector.extract_strided_slice %3 {offsets = [0, 0], sizes = [1, 128], strides = [1, 1]} : vector<2x128xf32> to vector<1x128xf32>
    %5 = vector.broadcast %0 : f32 to vector<1x128xf32>
    %6 = arith.mulf %5, %4 : vector<1x128xf32>
    %7 = vector.extract_strided_slice %3 {offsets = [1, 0], sizes = [1, 128], strides = [1, 1]} : vector<2x128xf32> to vector<1x128xf32>
    %8 = vector.broadcast %1 : f32 to vector<1x128xf32>
    %9 = arith.mulf %8, %7 : vector<1x128xf32>
    %10 = arith.addf %6, %9 : vector<1x128xf32>
    %11 = vector.broadcast %2 : f32 to vector<1x128xf32>
    %12 = arith.addf %10, %11 : vector<1x128xf32>
    %c0_2 = arith.constant 0 : index
    %c0_3 = arith.constant 0 : index
    %13 = vector.load %arg3[%c0_2, %c0_3] : memref<1x128xf32, #tpu.memory_space<vmem>>, vector<1x128xf32>
    tpu.vector_store %arg3[%c0_2, %c0_3], %12 {strides = array<i32>} : memref<1x128xf32, #tpu.memory_space<vmem>>, vector<1x128xf32>,
    return
  }
  func.func @transform_0(%arg0: i32, %arg1: memref<3xf32, #tpu.memory_space<smem>>) -> (i32, i32) {
    %c0_i32 = arith.constant 0 : i32
    %c0_i32_0 = arith.constant 0 : i32
    return %c0_i32, %arg0 : i32, i32
  }
  func.func @transform_1(%arg0: i32, %arg1: memref<3xf32, #tpu.memory_space<smem>>) -> (i32, i32) {
    %c0_i32 = arith.constant 0 : i32
    %c0_i32_0 = arith.constant 0 : i32
    return %c0_i32, %arg0 : i32, i32
  }
}

</mosaic_0001>

<bundles_post_ra>
// kernel: tpu_custom_call.1
= control target key start
LH: loop header
LB: loop body
LE: loop exit
PB: predicated region body
PF: predicated region fallthrough
CT: control target
= control target key end

     0   :  { %s127_s0 = inlined_call_operand.hbm [shape: f32[3], index: 0, kind: input, shape index: {}]   ;;  %s128_s1 = inlined_call_operand.vmem [shape: f32[2,128], index: 1, kind: input, shape index: {}]   ;;  %s129_s2 = inlined_call_operand.hbm [shape: f32[1,128], index: 2, kind: output, shape index: {}]  }
   0x1   :  { %s47_s11 = scalar_lea.hbm %s127_s0, 16 }
   0x2   :  { %p48_p0 = scmp.ne.s32.totalorder %s127_s0, %s47_s11  ;;  %p51_p1 = scmp.lt.u32.totalorder %s47_s11, %s127_s0 }
   0x4   :  { %p53_p2 = pnand %p51_p1, %p48_p0 }
   0x6   :  { %56 = shalt.err (!%p53_p2)  }
   0x7   :  { %s83_s16 = smov [#allocation3]  }
   0x8   :  { %8 = dma.hbm_to_smem %s127_s0, 16, %s83_s16, [#allocation2] }
   0x9   :  { %79 = dma.done.wait [#allocation2], 16 }
   0xa   :  { %80 = vsyncadd [#allocation2], 4294967280 }
   0xb   :  { %10 = sfence }
   0xc   :  { %s14_s19 = sld [smem:[#allocation3]]  ;;  %s43_s20 = sld [smem:[#allocation3 + $0x1]] }
   0xd   :  { %11 = vsyncpa [#allocation5], 0  ;;  %s44_s21 = sld [smem:[#allocation3 + $0x2]]  ;;  %v17_v0 = vld [vmem:[%s128_s1] sm:$0x3]  ;;  %s84_s24 = smov [#allocation4]  }
   0xe   :  { %s35_s25 = sshll.u32 %s84_s24, 4  ;;  %s36_s25 = int_to_ptr.vmem [resolvable:$true] %s35_s25 }
   0xf   :  { %s57_s0 = scalar_lea.vmem %s36_s25, 16  ;;  %s61_s26 = scalar_lea.vmem %s36_s25, 32 }
  0x10   :  { %p58_p3 = scmp.ne.s32.totalorder %s36_s25, %s57_s0  ;;  %p62_p4 = scmp.lt.s32.totalorder %s36_s25, %s36_s25 }
  0x11   :  { %p63_p5 = scmp.lt.s32.totalorder %s61_s26, %s57_s0 }
  0x12   :  { %v18_v1 = vstv %s14_s19  ;;  %v20_v2 = vstv %s43_s20 }
  0x13   :  { %v19_v3 = vmul.f32 %v18_v1, %v17_v0  ;;  %v21_v4 = vmul.f32 %v20_v2, %v17_v0  ;;  %v26_v6 = vstv %s44_s21  ;;  %p64_p6 = por %p63_p5, %p62_p4 }
  0x15   :  { %v23_v5 = vrot.slane %v21_v4, 1  ;;  %p65_p7 = pnand %p64_p6, %p58_p3 }
  0x17   :  { %v25_v7 = vadd.f32 %v23_v5, %v19_v3 }
  0x19   :  { %v27_v8 = vadd.f32 %v26_v6, %v25_v7 }
  0x1b   :  { %28 = vst [vmem:[#allocation4] sm:$0x1] %v27_v8 }
  0x1c   :  { %68 = shalt.err (!%p65_p7)
}
  0x1d   :  { %s69_s28 = scalar_lea.hbm %s129_s2, 16 }
  0x1e   :  { %p70_p8 = scmp.ne.s32.totalorder %s129_s2, %s69_s28  ;;  %p73_p9 = scmp.lt.u32.totalorder %s69_s28, %s129_s2 }
  0x20   :  { %p75_p10 = pnand %p73_p9, %p70_p8 }
  0x22   :  { %78 = shalt.err (!%p75_p10)
}
  0x23   :  { %38 = dma.vmem_to_hbm [thread:$0]  %s36_s25, 16, %s129_s2, [#allocation5]  }
  0x24   :  { %81 = dma.done.wait [#allocation5], 16  }
  0x25   :  { %82 = vsyncadd [#allocation5], 4294967280 }
  0x26   :  { %42 = vsyncpa [#allocation5], 1 }

</bundles_post_ra>
